<compile_context>
chip_gen: v7x
topology: tpu7x:2x2x1
jax: 0.10.0
libtpu: 0.0.40
codegen_flags: <defaults>
</compile_context>

<pallas_src>
import math

import jax
import jax.numpy as jnp
from jax.experimental import pallas as pl
from jax.experimental.pallas import tpu as pltpu

SUBLANE = 8  # second-to-last-dim alignment for f32 tiles


def _round_up(x, m):
    return ((x + m - 1) // m) * m


def _gelu_tanh(x):
    # tanh-approximate GELU: tanh runs on the EUP (otherwise-idle VLIW slot)
    # instead of the long erf polynomial on the VALU slots.
    return jax.nn.gelu(x, approximate=True)


def _gelu_exact(x):
    # Exact erf GELU (PyTorch F.gelu default) -- used only for the reference.
    return 0.5 * x * (1.0 + jax.lax.erf(x * (1.0 / math.sqrt(2.0))))


def header_res_kernel(x_ref, w0_ref, b0_ref, w1_ref, b1_ref, w2_ref, b2_ref,
                      o_ref):
    """Fused 3-layer MLP with residual; one row tile per grid step."""
    x = x_ref[...]                          # (tile_n, D_in) f32
    x_b = x.astype(jnp.bfloat16)

    # fc_0 -> gelu   (bf16 operands, f32 accumulation)
    h = jnp.dot(x_b, w0_ref[...], preferred_element_type=jnp.float32)
    h = _gelu_tanh(h + b0_ref[...])

    # fc_1 -> +x residual -> gelu   (residual added in f32)
    r = jnp.dot(h.astype(jnp.bfloat16), w1_ref[...],
                preferred_element_type=jnp.float32)
    r = _gelu_tanh(r + b1_ref[...] + x)

    # fc_2
    y = jnp.dot(r.astype(jnp.bfloat16), w2_ref[...],
                preferred_element_type=jnp.float32)
    o_ref[...] = (y + b2_ref[...]).astype(o_ref.dtype)


def header_forward(x, params, tile_n=2048):
    """Pallas wrapper. x: [N, D_in] float32 -> [N, D_out] float32.

    No padding, no post-slice: feature dims ride as full-extent block dims,
    rows are tiled on a ragged grid (partial last block handled by Pallas).
    """
    w0, b0, w1, b1, w2, b2 = params
    N, D_in = x.shape
    H = w0.shape[1]
    D_out = w2.shape[1]

    # Row tile: multiple of 8.  Cap so the row grid has >= 2 steps whenever N
    # allows (v7x: both TensorCores get work); no-op on single-TC v5e/v6e.
    if N > SUBLANE:
        two_step_cap = _round_up(pl.cdiv(N, 2), SUBLANE)
    else:
        two_step_cap = SUBLANE
    tile_n = max(SUBLANE, min(tile_n, two_step_cap))

    grid = (pl.cdiv(N, tile_n),)

    # Cast weights to bf16 once (halves weight DMA, single-pass bf16 MXU).
    w0b = w0.astype(jnp.bfloat16)
    w1b = w1.astype(jnp.bfloat16)
    w2b = w2.astype(jnp.bfloat16)

    def row_spec(d):
        # Last dim equals the full array dim -> legal even when d < 128.
        return pl.BlockSpec((tile_n, d), lambda i: (i, 0))

    def resident(shape):
        # Constant block index -> stays resident in VMEM across grid steps.
        return pl.BlockSpec(shape, lambda i: (0, 0))

    out = pl.pallas_call(
        header_res_kernel,
        out_shape=jax.ShapeDtypeStruct((N, D_out), x.dtype),
        grid=grid,
        in_specs=[
            row_spec(D_in),              # x row tile
            resident((D_in, H)),         # w0 (bf16)
            resident((1, H)),            # b0 (f32)
            resident((H, D_in)),         # w1 (bf16)
            resident((1, D_in)),         # b1 (f32)
            resident((D_in, D_out)),     # w2 (bf16)
            resident((1, D_out)),        # b2 (f32)
        ],
        out_specs=row_spec(D_out),
        compiler_params=pltpu.CompilerParams(
            dimension_semantics=("parallel",)),
    )(x, w0b, b0, w1b, b1, w2b, b2)

    return out


def init_header_params(key, input_size, hidden_size, output_size):
    """Deterministic init mimicking nn.Linear's U(-1/sqrt(fan_in), 1/sqrt(fan_in)).
    Weights stored as [in, out] (transposed vs torch's [out, in])."""
    ks = jax.random.split(key, 6)

    def lin(kw, kb, fan_in, fan_out):
        bound = 1.0 / math.sqrt(fan_in)
        w = jax.random.uniform(kw, (fan_in, fan_out), jnp.float32, -bound, bound)
        b = jax.random.uniform(kb, (1, fan_out), jnp.float32, -bound, bound)
        return w, b

    w0, b0 = lin(ks[0], ks[1], input_size, hidden_size)
    w1, b1 = lin(ks[2], ks[3], hidden_size, input_size)
    w2, b2 = lin(ks[4], ks[5], input_size, output_size)
    return (w0, b0, w1, b1, w2, b2)


def header_reference(x, params):
    """Plain-JAX f32/erf reference of the torch forward (net_type='res')."""
    w0, b0, w1, b1, w2, b2 = params
    h = _gelu_exact(x @ w0 + b0)
    r = _gelu_exact(h @ w1 + b1 + x)
    return r @ w2 + b2


if __name__ == "__main__":
    # Small shapes consistent with the module's Linear stack.
    # N deliberately not a multiple of the row tile to exercise the ragged
    # (no-pad) last block.
    N, INPUT, HIDDEN, OUTPUT = 20, 32, 64, 16

    key = jax.random.PRNGKey(0)
    kx, kp = jax.random.split(key)
    x = jax.random.normal(kx, (N, INPUT), dtype=jnp.float32)
    params = init_header_params(kp, INPUT, HIDDEN, OUTPUT)

    out = jax.block_until_ready(header_forward(x, params))
    ref = header_reference(x, params)

    assert out.shape == (N, OUTPUT)
    max_err = float(jnp.max(jnp.abs(out - ref)))
    # bf16 MXU operands + tanh-GELU intentionally differ from the exact
    # erf/f32 reference; loosened tolerance per the review.
    assert jnp.allclose(out, ref, atol=3e-2, rtol=3e-2), (
        f"max abs err {max_err}")

    print("KERNEL_OK")
</pallas_src>

<mosaic_0001>
module attributes {stable_mosaic.version = 11 : i64} {
  func.func @header_res_kernel(%arg0: i32, %arg1: memref<16x32xf32, #tpu.memory_space<vmem>>, %arg2: memref<32x64xbf16, #tpu.memory_space<vmem>>, %arg3: memref<1x64xf32, #tpu.memory_space<vmem>>, %arg4: memref<64x32xbf16, #tpu.memory_space<vmem>>, %arg5: memref<1x32xf32, #tpu.memory_space<vmem>>, %arg6: memref<32x16xbf16, #tpu.memory_space<vmem>>, %arg7: memref<1x16xf32, #tpu.memory_space<vmem>>, %arg8: memref<16x16xf32, #tpu.memory_space<vmem>>) attributes {dimension_semantics = [#tpu.dimension_semantics<parallel>], iteration_bounds = array<i64: 2>, scalar_prefetch = 0 : i64, scratch_operands = 0 : i64, tpu.core_type = #tpu.core_type<tc>, window_params = [{transform_indices = @transform_0, window_bounds = array<i64: 16, 32>}, {pipeline_mode = #tpu.pipeline_mode<synchronous>, transform_indices = @transform_1, window_bounds = array<i64: 32, 64>}, {pipeline_mode = #tpu.pipeline_mode<synchronous>, transform_indices = @transform_2, window_bounds = array<i64: 1, 64>}, {pipeline_mode = #tpu.pipeline_mode<synchronous>, transform_indices = @transform_3, window_bounds = array<i64: 64, 32>}, {pipeline_mode = #tpu.pipeline_mode<synchronous>, transform_indices = @transform_4, window_bounds = array<i64: 1, 32>}, {pipeline_mode = #tpu.pipeline_mode<synchronous>, transform_indices = @transform_5, window_bounds = array<i64: 32, 16>}, {pipeline_mode = #tpu.pipeline_mode<synchronous>, transform_indices = @transform_6, window_bounds = array<i64: 1, 16>}, {transform_indices = @transform_7, window_bounds = array<i64: 16, 16>}]} {
    %c0 = arith.constant 0 : index
    %c0_0 = arith.constant 0 : index
    %0 = vector.load %arg1[%c0, %c0_0] : memref<16x32xf32, #tpu.memory_space<vmem>>, vector<16x32xf32>
    %1 = arith.truncf %0 : vector<16x32xf32> to vector<16x32xbf16>
    %c0_1 = arith.constant 0 : index
    %c0_2 = arith.constant 0 : index
    %2 = vector.load %arg2[%c0_1, %c0_2] : memref<32x64xbf16, #tpu.memory_space<vmem>>, vector<32x64xbf16>
    %cst = arith.constant dense<0.000000e+00> : vector<16x64xf32>
    %3 = tpu.matmul %1, %2, %cst {dimension_numbers = #tpu.dot_dimension_numbers<[1], [0], [0], [1], [0, 0, 1, 1], [], []>} : vector<16x32xbf16>, vector<32x64xbf16>, vector<16x64xf32> -> vector<16x64xf32>
    %c0_3 = arith.constant 0 : index
    %c0_4 = arith.constant 0 : index
    %4 = vector.load %arg3[%c0_3, %c0_4] : memref<1x64xf32, #tpu.memory_space<vmem>>, vector<1x64xf32>
    %5 = vector.broadcast %4 : vector<1x64xf32> to vector<16x64xf32>
    %6 = arith.addf %3, %5 : vector<16x64xf32>
    %7 = arith.mulf %6, %6 : vector<16x64xf32>
    %8 = arith.mulf %6, %7 : vector<16x64xf32>
    %cst_5 = arith.constant 4.471500e-02 : f32
    %9 = vector.broadcast %cst_5 : f32 to vector<16x64xf32>
    %10 = arith.mulf %9, %8 : vector<16x64xf32>
    %11 = arith.addf %6, %10 : vector<16x64xf32>
    %cst_6 = arith.constant 0.797884583 : f32
    %12 = vector.broadcast %cst_6 : f32 to vector<16x64xf32>
    %13 = arith.mulf %12, %11 : vector<16x64xf32>
    %14 = math.tanh %13 : vector<16x64xf32>
    %cst_7 = arith.constant 1.000000e+00 : f32
    %15 = vector.broadcast %cst_7 : f32 to vector<16x64xf32>
    %16 = arith.addf %15, %14 : vector<16x64xf32>
    %cst_8 = arith.constant 5.000000e-01 : f32
    %17 = vector.broadcast %cst_8 : f32 to vector<16x64xf32>
    %18 = arith.mulf %17, %16 : vector<16x64xf32>
    %19 = arith.mulf %6, %18 : vector<16x64xf32>
    %20 = arith.truncf %19 : vector<16x64xf32> to vector<16x64xbf16>
    %c0_9 = arith.constant 0 : index
    %c0_10 = arith.constant 0 : index
    %21 = vector.load %arg4[%c0_9, %c0_10] : memref<64x32xbf16, #tpu.memory_space<vmem>>, vector<64x32xbf16>
    %cst_11 = arith.constant dense<0.000000e+00> : vector<16x32xf32>
    %22 = tpu.matmul %20, %21, %cst_11 {dimension_numbers = #tpu.dot_dimension_numbers<[1], [0], [0], [1], [0, 0, 1, 1], [], []>} : vector<16x64xbf16>, vector<64x32xbf16>, vector<16x32xf32> -> vector<16x32xf32>
    %c0_12 = arith.constant 0 : index
    %c0_13 = arith.constant 0 : index
    %23 = vector.load %arg5[%c0_12, %c0_13] : memref<1x32xf32, #tpu.memory_space<vmem>>, vector<1x32xf32>
    %24 = vector.broadcast %23 : vector<1x32xf32> to vector<16x32xf32>
    %25 = arith.addf %22, %24 : vector<16x32xf32>
    %26 = arith.addf %25, %0 : vector<16x32xf32>
    %27 = arith.mulf %26, %26 : vector<16x32xf32>
    %28 = arith.mulf %26, %27 : vector<16x32xf32>
    %cst_14 = arith.constant 4.471500e-02 : f32
    %29 = vector.broadcast %cst_14 : f32 to vector<16x32xf32>
    %30 = arith.mulf %29, %28 : vector<16x32xf32>
    %31 = arith.addf %26, %30 : vector<16x32xf32>
    %cst_15 = arith.constant 0.797884583 : f32
    %32 = vector.broadcast %cst_15 : f32 to vector<16x32xf32>
    %33 = arith.mulf %32, %31 : vector<16x32xf32>
    %34 = math.tanh %33 : vector<16x32xf32>
    %cst_16 = arith.constant 1.000000e+00 : f32
    %35 = vector.broadcast %cst_16 : f32 to vector<16x32xf32>
    %36 = arith.addf %35, %34 : vector<16x32xf32>
    %cst_17 = arith.constant 5.000000e-01 : f32
    %37 = vector.broadcast %cst_17 : f32 to vector<16x32xf32>
    %38 = arith.mulf %37, %36 : vector<16x32xf32>
    %39 = arith.mulf %26, %38 : vector<16x32xf32>
    %40 = arith.truncf %39 : vector<16x32xf32> to vector<16x32xbf16>
    %c0_18 = arith.constant 0 : index
    %c0_19 = arith.constant 0 : index
    %41 = vector.load %arg6[%c0_18, %c0_19] : memref<32x16xbf16, #tpu.memory_space<vmem>>, vector<32x16xbf16>
    %cst_20 = arith.constant dense<0.000000e+00> : vector<16x16xf32>
    %42 = tpu.matmul %40, %41, %cst_20 {dimension_numbers = #tpu.dot_dimension_numbers<[1], [0], [0], [1], [0, 0, 1, 1], [], []>} : vector<16x32xbf16>, vector<32x16xbf16>, vector<16x16xf32> -> vector<16x16xf32>
    %c0_21 = arith.constant 0 : index
    %c0_22 = arith.constant 0 : index
    %43 = vector.load %arg7[%c0_21, %c0_22] : memref<1x16xf32, #tpu.memory_space<vmem>>, vector<1x16xf32>
    %44 = vector.broadcast %43 : vector<1x16xf32> to vector<16x16xf32>
    %45 = arith.addf %42, %44 : vector<16x16xf32>
    %c0_23 = arith.constant 0 : index
    %c0_24 = arith.constant 0 : index
    %46 = vector.load %arg8[%c0_23, %c0_24] : memref<16x16xf32, #tpu.memory_space<vmem>>, vector<16x16xf32>
    tpu.vector_store %arg8[%c0_23, %c0_24], %45 {strides = array<i32>} : memref<16x16xf32, #tpu.memory_space<vmem>>, vector<16x16xf32>,
    return
  }
  func.func @transform_0(%arg0: i32) -> (i32, i32) {
    %c0_i32 = arith.constant 0 : i32
    %c0_i32_0 = arith.constant 0 : i32
    return %arg0, %c0_i32 : i32, i32
  }
  func.func @transform_1(%arg0: i32) -> (i32, i32) {
    %c0_i32 = arith.constant 0 : i32
    %c0_i32_0 = arith.constant 0 : i32
    %c0_i32_1 = arith.constant 0 : i32
    return %c0_i32, %c0_i32_0 : i32, i32
  }
  func.func @transform_2(%arg0: i32) -> (i32, i32) {
    %c0_i32 = arith.constant 0 : i32
    %c0_i32_0 = arith.constant 0 : i32
    %c0_i32_1 = arith.constant 0 : i32
    return %c0_i32, %c0_i32_0 : i32, i32
  }
  func.func @transform_3(%arg0: i32) -> (i32, i32) {
    %c0_i32 = arith.constant 0 : i32
    %c0_i32_0 = arith.constant 0 : i32
    %c0_i32_1 = arith.constant 0 : i32
    return %c0_i32, %c0_i32_0 : i32, i32
  }
  func.func @transform_4(%arg0: i32) -> (i32, i32) {
    %c0_i32 = arith.constant 0 : i32
    %c0_i32_0 = arith.constant 0 : i32
    %c0_i32_1 = arith.constant 0 : i32
    return %c0_i32, %c0_i32_0 : i32, i32
  }
  func.func @transform_5(%arg0: i32) -> (i32, i32) {
    %c0_i32 = arith.constant 0 : i32
    %c0_i32_0 = arith.constant 0 : i32
    %c0_i32_1 = arith.constant 0 : i32
    return %c0_i32, %c0_i32_0 : i32, i32
  }
  func.func @transform_6(%arg0: i32) -> (i32, i32) {
    %c0_i32 = arith.constant 0 : i32
    %c0_i32_0 = arith.constant 0 : i32
    %c0_i32_1 = arith.constant 0 : i32
    return %c0_i32, %c0_i32_0 : i32, i32
  }
  func.func @transform_7(%arg0: i32) -> (i32, i32) {
    %c0_i32 = arith.constant 0 : i32
    %c0_i32_0 = arith.constant 0 : i32
    return %arg0, %c0_i32 : i32, i32
  }
}

</mosaic_0001>

<bundles_post_ra>
// kernel: tpu_custom_call.1
= control target key start
LH: loop header
LB: loop body
LE: loop exit
PB: predicated region body
PF: predicated region fallthrough
CT: control target
= control target key end

     0   :  { %s1101_s24 = smov 0   ;;  %s1103_s25 = smov 0   ;;  %s1233_s0 = inlined_call_operand.vmem [shape: f32[20,32], index: 0, kind: input, shape index: {}]   ;;  %s1234_s1 = inlined_call_operand.vmem [shape: bf16[32,64], index: 1, kind: input, shape index: {}]   ;;  %s1235_s2 = inlined_call_operand.vmem [shape: f32[1,64], index: 2, kind: input, shape index: {}]   ;;  %s1236_s3 = inlined_call_operand.vmem [shape: bf16[64,32], index: 3, kind: input, shape index: {}]   ;;  %s1237_s4 = inlined_call_operand.vmem [shape: f32[1,32], index: 4, kind: input, shape index: {}]   ;;  %s1238_s5 = inlined_call_operand.vmem [shape: bf16[32,16], index: 5, kind: input, shape index: {}]   ;;  %s1239_s6 = inlined_call_operand.vmem [shape: f32[1,16], index: 6, kind: input, shape index: {}]   ;;  %s1240_s7 = inlined_call_operand.vmem [shape: f32[20,16], index: 7, kind: output, shape index: {}]  }
   0x1   :  { %s1105_s26 = smov 0  }
   0x2 LB: > { %s1114_s27 = sadd.s32 4294967295, %s1025_s26   ;;  %s1116_s28 = sadd.s32 1, %s1025_s26   ;;  %s1025_s26 = sphi %s1105_s26, %s1244_s26   ;;  %s1021_s25 = sphi %s1103_s25, %s1243_s25   ;;  %s1017_s24 = sphi %s1101_s24, %s1242_s24  }
   0x3   : > { %s173_s29 = ssub.s32 %s1025_s26, %s1116_s28  ;;  %s176_s30 = sadd.s32 1, %s1021_s25 }
   0x4   : > { %p174_p0 = scmp.eq.s32.totalorder %s173_s29, 0  ;;  %p186_p1 = scmp.ne.s32.totalorder %s1021_s25, %s1017_s24 }
   0x5   : > { %p187_p2 = scmp.eq.s32.totalorder %s1114_s27, 1  ;;  %p788_p3 = scmp.ge.s32.totalorder %s1025_s26, 1 }
   0x6   : > { %s1124_s8 = scalar_select %p174_p0, %s1021_s25, %s176_s30  }
   0x7   : > { %p1126_p4 = por %p187_p2, %p186_p1  ;;  %p246_p5 = scmp.lt.s32.totalorder %s1025_s26, 3 }
   0x9   : > { %p247_p6 = pnand %p788_p3, %p246_p5 }
   0xa   : > { %v955_v0 = vld [vmem:[%s1234_s1] sm:$0xff] (!%p247_p6)   ;;  %v1059_v1 = vmov (!%p247_p6), 0.0   ;;  %v956_v2 = vld [vmem:[%s1234_s1 + $0x8] sm:$0xff] (!%p247_p6)   ;;  %vm1060_vm0 = vmmov (!%p247_p6), 0   ;;  %s1141_s14 = sshll.u32 (!%p247_p6), %s1114_s27, 1  ;;  %vm327_vm1 = vcmask (!%p247_p6), 261120  }
   0xb   : > { %250 = sbr.rel (%p247_p6) target bundleno = 783 (0x30f), region = 48  ;;  %837 = vmatprep.subr.bf16.mxu0 (!%p247_p6), %v1059_v1  ;;  %845 = vmatprep.subr.bf16.mxu1 (!%p247_p6), %v1059_v1  ;;  %p286_p7 = scmp.lt.s32.totalorder (!%p247_p6), %s1141_s14, 2  ;;  %v957_v6 = vld [vmem:[%s1236_s3] sm:$0xff] (!%p247_p6)   ;;  %v958_v7 = vld [vmem:[%s1236_s3 + $0x8] sm:$0xff] (!%p247_p6)   ;;  %v959_v8 = vld [vmem:[%s1236_s3 + $0x10] sm:$0xff] (!%p247_p6)   ;;  %vm430_vm2 = vcmask (!%p247_p6), 523264  }
   0xc   : > { %838 = vmatpush3.bf16.msra.mxu0 (!%p247_p6), %v955_v0  ;;  %841 = vmatprep.mubr.msk.bf16.mxu0 (!%p247_p6), %vm1060_vm0, %v1059_v1  ;;  %v960_v9 = vld [vmem:[%s1236_s3 + $0x18] sm:$0xff] (!%p247_p6)   ;;  %v792_v10 = vld [vmem:[%s1235_s2] ss:$0 sm:$0xff] (!%p247_p6)  ;;  %v962_v37 = vld [vmem:[%s1238_s5 + $0x8] sm:$0xff] (!%p247_p6)   ;;  %s278_s20 = sand.u32 (!%p247_p6), 1, %s1017_s24   ;;  %vm563_vm3 = vcmask (!%p247_p6), 130048  }
   0xd   : > { %839 = vmatprep.subr.bf16.mxu0 (!%p247_p6), %v1059_v1  ;;  %853 = vmatprep.mubr.msk.bf16.mxu1 (!%p247_p6), %vm1060_vm0, %v1059_v1  ;;  %v961_v36 = vld [vmem:[%s1238_s5] sm:$0xff] (!%p247_p6)   ;;  %s789_s21 = sshll.u32 (!%p247_p6), %s278_s20, 4 }
   0xe   : > { %846 = vmatpush3.bf16.msra.mxu1 (!%p247_p6), %v957_v6  ;;  %v796_v38 = vld [vmem:[%s1237_s4] ss:$0 sm:$0xff] (!%p247_p6)  ;;  %s1188_s26 = scalar_lea.vmem (!%p247_p6), [#allocation2], %s789_s21  }
   0xf   : > { %847 = vmatprep.subr.bf16.mxu1 (!%p247_p6), %v1059_v1 }
  0x10   : > { %840 = vmatpush3.bf16.msra.mxu0 (!%p247_p6), %v956_v2  ;;  %v802_v2 = vld [vmem:[%s1239_s6] ss:$0 sm:$0xff] (!%p247_p6) }
  0x11   : > { %857 = vmatprep.subr.bf16.mxu0 (!%p247_p6), %v1059_v1 }
  0x12   : > { %s287_s15 = scalar_select %p286_p7, %s1141_s14, 2  ;;  %848 = vmatpush3.bf16.msra.mxu1 %v958_v7 }
  0x13   : > { %849 = vmatprep.subr.bf16.mxu1 %v1059_v1  ;;  %s574_s24 = ssub.s32 (%p1126_p4), 3, %s1141_s14  ;;  %s823_s29 = sshll.u32 (%p1126_p4), %s1114_s27, 4 }
  0x14   : > { %s791_s16 = sshll.u32 %s287_s15, 3  ;;  %p575_p8 = scmp.lt.s32.totalorder (%p1126_p4), %s574_s24, 2 }
  0x15   : > { %s289_s19 = scalar_lea.vmem %s1233_s0, %s791_s16  ;;  %s1199_s11 = scalar_lea.vmem (%p1126_p4), %s1240_s7, %s823_s29  }
  0x16   : > { %v301_v3 = vld [vmem:[%s289_s19] sm:$0xff]  ;;  %v302_v4 = vld [vmem:[%s289_s19 + $0x8] sm:$0xff]  ;;  %850 = vmatpush3.bf16.msra.mxu1 %v959_v8 }
  0x17   : > { %v303_v5 = vpack.c.bf16 %v302_v4, %v301_v3  ;;  %851 = vmatprep.subr.bf16.mxu1 %v1059_v1 }
  0x19   : > { %842 = vmatmul.mubr.msk.bf16.vlgmr.msra.gmra.mrb[0].mxu0 %vm327_vm1, %v303_v5 }
  0x1a   : > { %861 = vmatprep.mubr.msk.bf16.mxu0 %vm1060_vm0, %v1059_v1  ;;  %852 = vmatpush3.bf16.msra.mxu1 %v960_v9 }
  0x1b   : > { %858 = vmatpush3.bf16.msra.mxu0 %v961_v36 }
  0x1c   : > { %859 = vmatprep.subr.bf16.mxu0 %v1059_v1 }
  0x1f   : > { %860 = vmatpush3.bf16.msra.mxu0 %v962_v37 }
  0xec   : > { %v365_v11 = vpop.f32.mrb[0].mxu0 }
  0xed   : > { %v366_v12 = vadd.f32 %v792_v10, %v365_v11  ;;  %v843_v13 = vpop.f32.mrb[1].mxu0 }
  0xee   : > { %v368_v14 = vpop.f32.mrb[2].mxu0 }
  0xef   : > { %v372_v15 = vmul.f32 %v366_v12, %v366_v12  ;;  %v369_v16 = vadd.f32 %v792_v10, %v368_v14  ;;  %v844_v17 = vpop.f32.mrb[3].mxu0 }
  0xf1   : > { %v374_v18 = vmul.f32 %v372_v15, %v366_v12  ;;  %v373_v19 = vmul.f32 %v369_v16, %v369_v16 }
  0xf3   : > { %v376_v20 = vmul.f32 0.044715, %v374_v18  ;;  %v375_v21 = vmul.f32 %v373_v19, %v369_v16 }
  0xf5   : > { %v378_v22 = vadd.f32 %v376_v20, %v366_v12  ;;  %v377_v23 = vmul.f32 0.044715, %v375_v21 }
  0xf7   : > { %v380_v24 = vmul.f32 0.7978846, %v378_v22  ;;  %v379_v25 = vadd.f32 %v377_v23, %v369_v16 }
  0xf9   : > { %963 = vtanh.f32 %v380_v24  ;;  %v381_v26 = vmul.f32 0.7978846, %v379_v25 }
  0xfb   : > { %965 = vtanh.f32 %v381_v26 }
 0x103   : > { %v964_v27 = vpop.eup %963 }
 0x104   : > { %v384_v28 = vadd.f32 1.0, %v964_v27 }
 0x105   : > { %v966_v29 = vpop.eup %965 }
 0x106   : > { %v386_v30 = vmul.f32 0.5, %v384_v28  ;;  %v385_v31 = vadd.f32 1.0, %v966_v29 }
 0x108   : > { %v387_v32 = vmul.f32 0.5, %v385_v31  ;;  %v388_v33 = vmul.f32 %v386_v30, %v366_v12 }
 0x10a   : > { %v389_v34 = vmul.f32 %v387_v32, %v369_v16 }
 0x10c   : > { %v390_v35 = vpack.c.bf16 %v389_v34, %v388_v33 }
 0x10e   : > { %854 = vmatmul.mubr.msk.bf16.vlgmr.msra.gmra.mrb[0].mxu1 %vm430_vm2, %v390_v35 }
 0x1e1   : > { %v468_v39 = vpop.f32.mrb[0].mxu1 }
 0x1e2   : > { %v469_v40 = vadd.f32 %v796_v38, %v468_v39  ;;  %v855_v41 = vpop.f32.mrb[1].mxu1 }
 0x1e3   : > { %v471_v42 = vpop.f32.mrb[2].mxu1 }
 0x1e4   : > { %v475_v43 = vadd.f32 %v469_v40, %v301_v3  ;;  %v472_v44 = vadd.f32 %v796_v38, %v471_v42  ;;  %v856_v45 = vpop.f32.mrb[3].mxu1 }
 0x1e6   : > { %v477_v46 = vmul.f32 %v475_v43, %v475_v43  ;;  %v476_v47 = vadd.f32 %v472_v44, %v302_v4 }
 0x1e8   : > { %v479_v48 = vmul.f32 %v477_v46, %v475_v43  ;;  %v478_v49 = vmul.f32 %v476_v47, %v476_v47 }
 0x1ea   : > { %v481_v50 = vmul.f32 0.044715, %v479_v48  ;;  %v480_v51 = vmul.f32 %v478_v49, %v476_v47 }
 0x1ec   : > { %v483_v52 = vadd.f32 %v481_v50, %v475_v43  ;;  %v482_v53 = vmul.f32 0.044715, %v480_v51 }
 0x1ee   : > { %v485_v54 = vmul.f32 0.7978846, %v483_v52  ;;  %v484_v55 = vadd.f32 %v482_v53, %v476_v47 }
 0x1f0   : > { %967 = vtanh.f32 %v485_v54  ;;  %v486_v56 = vmul.f32 0.7978846, %v484_v55 }
 0x1f2   : > { %969 = vtanh.f32 %v486_v56 }
 0x1fa   : > { %v968_v57 = vpop.eup %967 }
 0x1fb   : > { %v489_v58 = vadd.f32 1.0, %v968_v57 }
 0x1fc   : > { %v970_v59 = vpop.eup %969 }
 0x1fd   : > { %v491_v60 = vmul.f32 0.5, %v489_v58  ;;  %v490_v61 = vadd.f32 1.0, %v970_v59 }
 0x1ff   : > { %v492_v62 = vmul.f32 0.5, %v490_v61  ;;  %v493_v63 = vmul.f32 %v491_v60, %v475_v43 }
 0x201   : > { %v494_v0 = vmul.f32 %v492_v62, %v476_v47 }
 0x203   : > { %v495_v1 = vpack.c.bf16 %v494_v0, %v493_v63 }
 0x205   : > { %862 = vmatmul.mubr.msk.bf16.vlgmr.msra.gmra.mrb[4].mxu0 %vm327_vm1, %v495_v1 }
 0x2d7   : > { %572 = sbr.rel (!%p1126_p4) target bundleno = 783 (0x30f), region = 52 }
 0x2d8   : > { %v556_v3 = vpop.f32.mrb[4].mxu0 }
 0x2d9   : > { %v557_v4 = vadd.f32 %v802_v2, %v556_v3  ;;  %v863_v5 = vpop.f32.mrb[5].mxu0 }
 0x2da   : > { %v559_v6 = vpop.f32.mrb[6].mxu0 }
 0x2db   : > { %564 = vst.msk [vmem:[%s1188_s26] sm:$0xff] %vm563_vm3, %v557_v4  ;;  %v560_v7 = vadd.f32 %v802_v2, %v559_v6  ;;  %v864_v8 = vpop.f32.mrb[7].mxu0 }
 0x2dd   : > { %565 = vst.msk [vmem:[%s1188_s26 + $0x8] sm:$0xff] %vm563_vm3, %v560_v7 }
 0x2de   : > { %s1246_s24 = smov (!%p575_p8, %s574_s24), 2 }
 0x2df   : > { %s808_s12 = sshll.u32 %s1246_s24, 7 }
 0x2e0   : > { %p811_p9 = scmp.eq.s32.totalorder %s808_s12, 0 }
 0x2e1   : > { %s1205_s13 = sshrl.u32 (!%p811_p9), %s1246_s24, 1 }
 0x2e2   : > { %583 = sbr.rel (%p811_p9) target bundleno = 783 (0x30f), region = 56  ;;  %p812_p10 = scmp.le.s32.totalorder (!%p811_p9), %s1205_s13, 0 }
 0x2e9   : > { %741 = sbr.rel (%p812_p10) target bundleno = 762 (0x2fa), region = 132  ;;  %s1027_s27 = smov (!%p812_p10), %s1199_s11  }
 0x2ea   : > { %s1031_s9 = smov (!%p812_p10), %s1188_s26   ;;  %s1035_s14 = smov (!%p812_p10), 0  }
 0x2eb   : > { %s1039_s15 = smov (!%p812_p10), 0  }
 0x2f0 LB: >> { %v647_v9 = vld [vmem:[%s1033_s9] sm:$0xff]  ;;  %v649_v10 = vld [vmem:[%s1033_s9 + $0x8] sm:$0xff]  ;;  %s651_s16 = sadd.s32 1, %s1037_s14  ;;  %s641_s15 = sadd.s32 1, %s1041_s15   ;;  %s1041_s15 = sphi %s1039_s15, %s641_s15   ;;  %s1037_s14 = sphi %s1035_s14, %s1036_s14   ;;  %s1033_s9 = sphi %s1031_s9, %s656_s9   ;;  %s1029_s27 = sphi %s1027_s27, %s657_s27  }
 0x2f1   : >> { %648 = vst [vmem:[%s1029_s27] sm:$0xff] %v647_v9  ;;  %650 = vst [vmem:[%s1029_s27 + $0x8] sm:$0xff] %v649_v10  ;;  %p652_p11 = scmp.ge.s32.totalorder %s651_s16, %s1205_s13  ;;  %p640_p12 = scmp.ge.s32.totalorder %s641_s15, %s1205_s13 }
 0x2f3   : >> { %s1248_s16 = smov (%p652_p11, %s651_s16), 0  ;;  %643 = sbr.rel (!%p640_p12) target bundleno = 752 (0x2f0), region = 138 }
 0x2f4   : >> { %s813_s17 = sshll.u32 %s1248_s16, 4  ;;  %s1036_s14 = smov %s1248_s16  }
 0x2f5   : >> { %s656_s9 = scalar_lea.vmem %s1188_s26, %s813_s17 [#allocation2]   ;;  %s657_s27 = scalar_lea.vmem %s1199_s11, %s813_s17  }
 0x2fa PF: > { %s1215_s18 = sand.u32 1, %s1246_s24   ;;  %s824_s19 = sshll.u32 %s1205_s13, 4 }
 0x2fb   : > { %s662_s20 = scalar_lea.vmem %s1188_s26, %s824_s19 [#allocation2]   ;;  %s664_s21 = scalar_lea.vmem %s1199_s11, %s824_s19  }
 0x2fc   : > { %p818_p13 = scmp.le.s32.totalorder %s1215_s18, 0 }
 0x2fd   : > { %s1043_s22 = smov (!%p818_p13), %s664_s21   ;;  %s1047_s23 = smov (!%p818_p13), %s662_s20  }
 0x2fe   : > { %755 = sbr.rel (%p818_p13) target bundleno = 783 (0x30f), region = 143  ;;  %s1051_s29 = smov (!%p818_p13), 0  }
 0x2ff   : > { %s1055_s30 = smov (!%p818_p13), 0  }
 0x305 LB: >> { %v674_v11 = vld [vmem:[%s1049_s23] sm:$0xff]  ;;  %s676_s24 = sadd.s32 1, %s1053_s29  ;;  %s668_s30 = sadd.s32 1, %s1057_s30   ;;  %s1057_s30 = sphi %s1055_s30, %s668_s30   ;;  %s1053_s29 = sphi %s1051_s29, %s1052_s29   ;;  %s1049_s23 = sphi %s1047_s23, %s681_s23   ;;  %s1045_s22 = sphi %s1043_s22, %s682_s22  }
 0x306   : >> { %675 = vst [vmem:[%s1045_s22] sm:$0xff] %v674_v11  ;;  %p677_p0 = scmp.ge.s32.totalorder %s676_s24, %s1215_s18  ;;  %p667_p1 = scmp.ge.s32.totalorder %s668_s30, %s1215_s18 }
 0x308   : >> { %s1250_s24 = smov (%p677_p0, %s676_s24), 0  ;;  %670 = sbr.rel (!%p667_p1) target bundleno = 773 (0x305), region = 149 }
 0x309   : >> { %s819_s26 = sshll.u32 %s1250_s24, 3  ;;  %s1052_s29 = smov %s1250_s24  }
 0x30a   : >> { %s681_s23 = scalar_lea.vmem %s662_s20, %s819_s26 [#allocation2]   ;;  %s682_s22 = scalar_lea.vmem %s664_s21, %s819_s26  }
 0x30f PF: > { %p14_p2 = scmp.ge.s32.totalorder %s1116_s28, 4   ;;  %s1242_s24 = smov %s1021_s25 }
 0x310   : > { %s1243_s25 = smov %s1124_s8  ;;  %s1244_s26 = smov %s1116_s28 }
 0x311   :  { %16 = sbr.rel (!%p14_p2) target bundleno = 2 (0x2), region = 160 }

</bundles_post_ra>
